<compile_context>
chip_gen: v5e
topology: v5e:2x2
jax: 0.10.0
libtpu: 0.0.40
codegen_flags: <defaults>
</compile_context>

<pallas_src>
import math

import jax
import jax.numpy as jnp
from jax import lax
from jax.experimental import pallas as pl
from jax.experimental.pallas import tpu as pltpu

# QuantizationConfig defaults from the reference module
A_NUM_BIT = 32          # activation_num_bit
W_NUM_BIT = 32          # weight_num_bit
PER_CHANNEL = True      # per_channel weight scale


def _round_up(v, m):
    return ((v + m - 1) // m) * m


def _weight_fake_quant(w, s, num_bit, per_channel):
    """weight_quantize() from the reference, hoisted out of the M/N/K grid.

    Identity when num_bit == 32 (default config). Runs once per call instead
    of once per (i, j, k) grid step, so the hot kernel loop is pure MXU.
    """
    if num_bit == 32:
        return w
    qn = -(2.0 ** (num_bit - 1))
    qp = 2.0 ** (num_bit - 1) - 1.0
    s = s.astype(w.dtype)
    if per_channel:
        s = s.reshape(-1, 1)            # (N, 1): broadcast over K
    else:
        s = s.reshape(1, 1)             # scalar scale
    return (jnp.round(jnp.clip(w / (s + 1e-9), qn, qp)) * s).astype(w.dtype)


def _make_linear_q_kernel(a_num_bit):
    """Kernel factory: the activation fake-quant branch is compiled in only
    when a_num_bit < 32 (Python-level, so the default path is pure matmul)."""
    a_quant = a_num_bit != 32

    def kernel(*refs):
        if a_quant:
            x_ref, w_ref, b_ref, a_s_ref, a_b_ref, o_ref, acc_ref = refs
        else:
            x_ref, w_ref, b_ref, o_ref, acc_ref = refs

        k = pl.program_id(2)

        @pl.when(k == 0)
        def _():
            acc_ref[...] = jnp.zeros_like(acc_ref)

        x = x_ref[...]                               # (tm, tk), native dtype
        if a_quant:
            # activation_quantize() from the reference (straight-through fwd).
            qn = -(2.0 ** (a_num_bit - 1))
            qp = 2.0 ** (a_num_bit - 1) - 1.0
            a_s = a_s_ref[0]
            a_b = a_b_ref[0]
            inv_s = 1.0 / (a_s + 1e-9)               # scalar, once per tile
            x = (jnp.round(jnp.clip((x - a_b) * inv_s, qn, qp)) * a_s
                 + a_b).astype(x_ref.dtype)

        # (tm, tk) @ (tk, tn) -> (tm, tn); K already on the RHS sublane axis,
        # so no XLU transpose on the MXU feed path. f32 accumulation.
        acc_ref[...] += lax.dot_general(
            x, w_ref[...],
            dimension_numbers=(((1,), (0,)), ((), ())),
            preferred_element_type=jnp.float32)

        @pl.when(k == pl.num_programs(2) - 1)
        def _():
            o_ref[...] = (acc_ref[...]
                          + b_ref[...].astype(jnp.float32)).astype(o_ref.dtype)

    return kernel


def linear_q_forward(x, weight, bias, a_s, a_b, w_s, *,
                     a_num_bit=A_NUM_BIT, w_num_bit=W_NUM_BIT,
                     per_channel=PER_CHANNEL,
                     tm=256, tn=256, tk=512):
    """Forward of the quantize-aware Linear: activation_quantize(x) @
    weight_quantize(W).T + bias. Identical to nn.Linear for the default
    32-bit config."""
    orig_shape = x.shape
    K = orig_shape[-1]
    x2 = x.reshape(-1, K)
    M = x2.shape[0]
    N, K2 = weight.shape
    assert K == K2

    # One-shot weight fake-quant (identity at 32 bit), then pre-transpose to
    # [K, N] so each RHS tile arrives MXU-ready.
    w_t = jnp.swapaxes(_weight_fake_quant(weight, w_s, w_num_bit, per_channel),
                       0, 1)

    # Clamp tiles to the (padded) problem, keeping (8, 128) alignment and a
    # lane-dense output tile (tn multiple of 128).
    tm = min(tm, _round_up(M, 8))
    tn = min(tn, _round_up(N, 128))
    tk = min(tk, _round_up(K, 128))
    Mp, Np, Kp = _round_up(M, tm), _round_up(N, tn), _round_up(K, tk)

    x_p = jnp.pad(x2, ((0, Mp - M), (0, Kp - K)))
    w_p = jnp.pad(w_t, ((0, Kp - K), (0, Np - N)))
    b_p = jnp.pad(bias.reshape(1, N).astype(jnp.float32),
                  ((0, 0), (0, Np - N)))

    grid = (Mp // tm, Np // tn, Kp // tk)

    in_specs = [
        pl.BlockSpec((tm, tk), lambda i, j, k: (i, k)),   # x
        pl.BlockSpec((tk, tn), lambda i, j, k: (k, j)),   # W^T (pre-quantized)
        pl.BlockSpec((1, tn), lambda i, j, k: (0, j)),    # bias
    ]
    args = [x_p, w_p, b_p]
    if a_num_bit != 32:
        # Only plumb the activation-quant scalars when they are actually used.
        in_specs += [pl.BlockSpec(memory_space=pltpu.MemorySpace.SMEM)] * 2
        args += [a_s.astype(jnp.float32).reshape(1),
                 a_b.astype(jnp.float32).reshape(1)]

    itemsize = jnp.dtype(x.dtype).itemsize
    out = pl.pallas_call(
        _make_linear_q_kernel(a_num_bit),
        out_shape=jax.ShapeDtypeStruct((Mp, Np), x.dtype),
        grid_spec=pltpu.PrefetchScalarGridSpec(
            num_scalar_prefetch=0,
            grid=grid,
            in_specs=in_specs,
            out_specs=pl.BlockSpec((tm, tn), lambda i, j, k: (i, j)),
            scratch_shapes=[pltpu.VMEM((tm, tn), jnp.float32)],
        ),
        compiler_params=pltpu.CompilerParams(
            dimension_semantics=("parallel", "parallel", "arbitrary"),
            vmem_limit_bytes=48 * 1024 * 1024,
        ),
        cost_estimate=pl.CostEstimate(
            flops=2 * Mp * Np * Kp,
            bytes_accessed=itemsize * (Mp * Kp + Kp * Np + Mp * Np),
            transcendentals=0),
    )(*args)

    out = out[:M, :N]
    return out.reshape(orig_shape[:-1] + (N,))


# ----- quantizer state init (first-batch path of the reference) -----
def activation_quantizer_init(x, num_bit):
    qp = 2.0 ** (num_bit - 1) - 1.0
    qn = -(2.0 ** (num_bit - 1))
    max_a = jnp.max(x)
    min_a = jnp.min(x)
    s = ((max_a - min_a + 1e-9) / (qp - qn)).reshape(1)
    b = (min_a - s * qn).reshape(1)
    return s, b


def weight_quantizer_init(w, num_bit, per_channel):
    div = 2.0 ** num_bit - 1.0
    if per_channel:
        w2 = w.reshape(w.shape[0], -1)
        mean = jnp.mean(w2, axis=1)
        std = jnp.std(w2, axis=1, ddof=1)           # torch.std is unbiased
        s = jnp.maximum(jnp.abs(mean - 3 * std), jnp.abs(mean + 3 * std)) / div
    else:
        mean = jnp.mean(w)
        std = jnp.std(w, ddof=1)
        s = (jnp.maximum(jnp.abs(mean - 3 * std),
                         jnp.abs(mean + 3 * std)) / div).reshape(1)
    return s
# TODO(synk): training-time state (running init_stat updates, LSQ-style
# backward, gradient quantization) is autograd machinery, not forward compute.


if __name__ == "__main__":
    # Small shapes consistent with nn.Linear: x: [batch, in_features].
    # Chosen so the grid exercises padding and a multi-step K accumulation.
    batch, in_features, out_features = 16, 256, 192

    key = jax.random.PRNGKey(0)
    kx, kw = jax.random.split(key, 2)

    x = jax.random.normal(kx, (batch, in_features), dtype=jnp.float32)

    # weight_init: kaiming_normal -> sqrt(1/fan_in) * randn([out, in]) * init_weight(=1)
    weight = jnp.sqrt(1.0 / in_features) * jax.random.normal(
        kw, (out_features, in_features), dtype=jnp.float32)
    # bias: kaiming_normal * init_bias(=0) -> zeros
    bias = jnp.zeros((out_features,), dtype=jnp.float32)

    # first-batch quantizer-state init (no effect on output at 32 bit,
    # exactly like the PyTorch module).
    a_s, a_b = activation_quantizer_init(x, A_NUM_BIT)
    w_s = weight_quantizer_init(weight, W_NUM_BIT, PER_CHANNEL)

    out = linear_q_forward(x, weight, bias, a_s, a_b, w_s, tk=128)
    out = jax.block_until_ready(out)

    # pure-JAX reference (32-bit path of LinearQ.forward: x @ W.T + bias)
    ref = x @ weight.T + bias[None, :]
    assert out.shape == (batch, out_features)
    assert jnp.allclose(out, ref, atol=1e-5, rtol=1e-5), float(
        jnp.max(jnp.abs(out - ref)))

    print("KERNEL_OK")
</pallas_src>

<mosaic_0001>
module attributes {stable_mosaic.version = 11 : i64} {
  func.func @kernel(%arg0: i32, %arg1: i32, %arg2: i32, %arg3: memref<16x128xf32, #tpu.memory_space<vmem>>, %arg4: memref<128x256xf32, #tpu.memory_space<vmem>>, %arg5: memref<1x256xf32, #tpu.memory_space<vmem>>, %arg6: memref<16x256xf32, #tpu.memory_space<vmem>>, %arg7: memref<16x256xf32, #tpu.memory_space<vmem>>) attributes {dimension_semantics = [#tpu.dimension_semantics<parallel>, #tpu.dimension_semantics<parallel>, #tpu.dimension_semantics<arbitrary>], iteration_bounds = array<i64: 1, 1, 2>, scalar_prefetch = 0 : i64, scratch_operands = 1 : i64, tpu.core_type = #tpu.core_type<tc>, window_params = [{transform_indices = @transform_0, window_bounds = array<i64: 16, 128>}, {transform_indices = @transform_1, window_bounds = array<i64: 128, 256>}, {transform_indices = @transform_2, window_bounds = array<i64: 1, 256>}, {transform_indices = @transform_3, window_bounds = array<i64: 16, 256>}]} {
    %c0_i32 = arith.constant 0 : i32
    %0 = arith.cmpi eq, %arg2, %c0_i32 : i32
    %1 = arith.extui %0 : i1 to i32
    %c0_i32_0 = arith.constant 0 : i32
    %2 = arith.cmpi ne, %1, %c0_i32_0 : i32
    scf.if %2 {
      %cst_9 = arith.constant 0.000000e+00 : f32
      %12 = vector.broadcast %cst_9 : f32 to vector<16x256xf32>
      %c0_10 = arith.constant 0 : index
      %c0_11 = arith.constant 0 : index
      %13 = vector.load %arg7[%c0_10, %c0_11] : memref<16x256xf32, #tpu.memory_space<vmem>>, vector<16x256xf32>
      tpu.vector_store %arg7[%c0_10, %c0_11], %12 {strides = array<i32>} : memref<16x256xf32, #tpu.memory_space<vmem>>, vector<16x256xf32>,
    } else {
    }
    %c0 = arith.constant 0 : index
    %c0_1 = arith.constant 0 : index
    %3 = vector.load %arg3[%c0, %c0_1] : memref<16x128xf32, #tpu.memory_space<vmem>>, vector<16x128xf32>
    %c0_2 = arith.constant 0 : index
    %c0_3 = arith.constant 0 : index
    %4 = vector.load %arg7[%c0_2, %c0_3] : memref<16x256xf32, #tpu.memory_space<vmem>>, vector<16x256xf32>
    %c0_4 = arith.constant 0 : index
    %c0_5 = arith.constant 0 : index
    %5 = vector.load %arg4[%c0_4, %c0_5] : memref<128x256xf32, #tpu.memory_space<vmem>>, vector<128x256xf32>
    %cst = arith.constant dense<0.000000e+00> : vector<16x256xf32>
    %6 = tpu.matmul %3, %5, %cst {dimension_numbers = #tpu.dot_dimension_numbers<[1], [0], [0], [1], [0, 0, 1, 1], [], []>} : vector<16x128xf32>, vector<128x256xf32>, vector<16x256xf32> -> vector<16x256xf32>
    %7 = arith.addf %4, %6 : vector<16x256xf32>
    %c0_6 = arith.constant 0 : index
    %c0_7 = arith.constant 0 : index
    %8 = vector.load %arg7[%c0_6, %c0_7] : memref<16x256xf32, #tpu.memory_space<vmem>>, vector<16x256xf32>
    tpu.vector_store %arg7[%c0_6, %c0_7], %7 {strides = array<i32>} : memref<16x256xf32, #tpu.memory_space<vmem>>, vector<16x256xf32>,
    %c1_i32 = arith.constant 1 : i32
    %9 = arith.cmpi eq, %arg2, %c1_i32 : i32
    %10 = arith.extui %9 : i1 to i32
    %c0_i32_8 = arith.constant 0 : i32
    %11 = arith.cmpi ne, %10, %c0_i32_8 : i32
    scf.if %11 {
      %c0_9 = arith.constant 0 : index
      %c0_10 = arith.constant 0 : index
      %12 = vector.load %arg7[%c0_9, %c0_10] : memref<16x256xf32, #tpu.memory_space<vmem>>, vector<16x256xf32>
      %c0_11 = arith.constant 0 : index
      %c0_12 = arith.constant 0 : index
      %13 = vector.load %arg5[%c0_11, %c0_12] : memref<1x256xf32, #tpu.memory_space<vmem>>, vector<1x256xf32>
      %14 = vector.broadcast %13 : vector<1x256xf32> to vector<16x256xf32>
      %15 = arith.addf %12, %14 : vector<16x256xf32>
      %c0_13 = arith.constant 0 : index
      %c0_14 = arith.constant 0 : index
      %16 = vector.load %arg6[%c0_13, %c0_14] : memref<16x256xf32, #tpu.memory_space<vmem>>, vector<16x256xf32>
      tpu.vector_store %arg6[%c0_13, %c0_14], %15 {strides = array<i32>} : memref<16x256xf32, #tpu.memory_space<vmem>>, vector<16x256xf32>,
    } else {
    }
    return
  }
  func.func @transform_0(%arg0: i32, %arg1: i32, %arg2: i32) -> (i32, i32) {
    %c0_i32 = arith.constant 0 : i32
    return %arg0, %arg2 : i32, i32
  }
  func.func @transform_1(%arg0: i32, %arg1: i32, %arg2: i32) -> (i32, i32) {
    %c0_i32 = arith.constant 0 : i32
    return %arg2, %arg1 : i32, i32
  }
  func.func @transform_2(%arg0: i32, %arg1: i32, %arg2: i32) -> (i32, i32) {
    %c0_i32 = arith.constant 0 : i32
    %c0_i32_0 = arith.constant 0 : i32
    return %c0_i32, %arg1 : i32, i32
  }
  func.func @transform_3(%arg0: i32, %arg1: i32, %arg2: i32) -> (i32, i32) {
    %c0_i32 = arith.constant 0 : i32
    return %arg0, %arg1 : i32, i32
  }
}

</mosaic_0001>

<bundles_post_ra>
// kernel: tpu_custom_call.1
= control target key start
LH: loop header
LB: loop body
LE: loop exit
PB: predicated region body
PF: predicated region fallthrough
CT: control target
= control target key end

     0   :  { %s1047_s0 = inlined_call_operand.hbm [shape: f32[16,256], index: 0, kind: input, shape index: {}]   ;;  %s1048_s1 = inlined_call_operand.hbm [shape: f32[256,256], index: 1, kind: input, shape index: {}]   ;;  %s1049_s2 = inlined_call_operand.hbm [shape: f32[1,256], index: 2, kind: input, shape index: {}]   ;;  %s1050_s3 = inlined_call_operand.hbm [shape: f32[16,256], index: 3, kind: output, shape index: {}]  }
   0x1   :  { %1051 = sst [smem:[#allocation14_spill]] %s1047_s0 }
   0x2   :  { %1052 = sst [smem:[#allocation15_spill]] %s1049_s2 }
   0x3   :  { %8 = vsyncpa [#allocation4], 0 }
   0x4   :  { %10 = vsyncpa [#allocation4 + $0x1], 0 }
   0x5   :  { %11 = vsyncpa [#allocation7], 0 }
   0x6   :  { %13 = vsyncpa [#allocation7 + $0x1], 0 }
   0x7   :  { %14 = vsyncpa [#allocation5], 0  ;;  %s878_s12 = smov 0   ;;  %s880_s13 = smov 0  }
   0x8   :  { %s882_s14 = smov 0   ;;  %s884_s15 = smov 0  }
   0x9   :  { %s886_s16 = smov 0   ;;  %s888_s17 = smov 0  }
   0xa LB: > { %s907_s18 = sadd.s32 4294967295, %s847_s17   ;;  %s48_s19 = sadd.s32 1, %s835_s14  ;;  %s847_s17 = sphi %s888_s17, %s20_s17   ;;  %s843_s16 = sphi %s886_s16, %s1063_s16   ;;  %s839_s15 = sphi %s884_s15, %s1062_s15   ;;  %s835_s14 = sphi %s882_s14, %s1061_s14   ;;  %s831_s13 = sphi %s880_s13, %s1060_s13   ;;  %s827_s12 = sphi %s878_s12, %s1059_s12  }
   0xb   : > { %p55_p0 = scmp.ne.s32.totalorder %s835_s14, %s831_s13  ;;  %p56_p1 = scmp.eq.s32.totalorder %s847_s17, 0 }
   0xc   : > { %p61_p2 = scmp.ne.s32.totalorder %s831_s13, %s827_s12  ;;  %p62_p3 = scmp.eq.s32.totalorder %s907_s18, 0 }
   0xd   : > { %p915_p4 = por %p56_p1, %p55_p0  ;;  %p529_p5 = scmp.ge.s32.totalorder %s847_s17, 1 }
   0xe   : > { %p922_p6 = por %p62_p3, %p61_p2  ;;  %p154_p7 = scmp.lt.s32.totalorder %s847_s17, 3 }
   0xf   : > { %s1055_s2 = sld [smem:[#allocation15_spill]]  ;;  %s849_s26 = smov [#allocation8]  }
  0x10   : > { %p930_p8 = pnand %p529_p5, %p154_p7  ;;  %s170_s27 = sshll.u32 %s849_s26, 4  ;;  %s171_s27 = int_to_ptr.vmem [resolvable:$true] %s170_s27 }
  0x11   : > { %p606_p10 = scmp.lt.s32.totalorder %s847_s17, 2  ;;  %s32_s29 = sadd.s32 1, %s843_s16 }
  0x12   : > { %p594_p9 = pneg %p930_p8  ;;  %p33_p13 = scmp.ge.s32.totalorder %s32_s29, 2 }
  0x13   : > { %p941_p12 = pnand %p606_p10, %p915_p4  ;;  %s181_s30 = sand.u32 1, %s835_s14  }
  0x14   : > { %p595_p11 = pnand %p594_p9, %p62_p3  ;;  %s533_s4 = sshll.u32 %s843_s16, 3 }
  0x15   : > { %s168_s24 = sshll.u32 %s1055_s2, 4  ;;  %s1065_s29 = smov (%p33_p13, %s32_s29), 0  ;;  %s169_s24 = int_to_ptr.hbm [resolvable:$true] %s168_s24 }
  0x16   : > { %597 = dma.hbm_to_vmem [thread:$0]  (!%p595_p11), %s169_s24, 32, %s171_s27, [#allocation7]  }
  0x17   : > { %s532_s5 = sshll.u32 %s181_s30, 4  ;;  %s44_s6 = ssub.s32 %s843_s16, %s1065_s29 }
  0x18   : > { %p46_p0 = scmp.eq.s32.totalorder %s44_s6, 0  ;;  %s1058_s0 = sld [smem:[#allocation14_spill]] }
  0x19   : > { %s185_s11 = scalar_lea.vmem [#allocation3], %s532_s5  ;;  %s205_s22 = sand.u32 1, %s847_s17  }
  0x1a   : > { %s195_s12 = sshll.u32 %s185_s11, 4  ;;  %s182_s23 = scalar_lea.sflag [#allocation4], %s181_s30  ;;  %s196_s12 = int_to_ptr.vmem [resolvable:$true] %s195_s12 }
  0x1b   : > { %s958_s20 = scalar_select %p46_p0, %s835_s14, %s48_s19  }
  0x1c   : > { %s850_s24 = smov 256   ;;  %s851_s26 = smov 128  }
  0x1d   : > { %s852_s27 = smov 8   ;;  %s534_s6 = sshll.u32 %s181_s30, 8 }
  0x1e   : > { %s192_s9 = scalar_lea.hbm %s1058_s0, %s533_s4  ;;  %s549_s2 = sshll.u32 %s843_s16, 8 }
  0x1f   : > { %s193_s10 = sshll.u32 %s192_s9, 4  ;;  %s217_s5 = scalar_lea.hbm %s1048_s1, %s549_s2  ;;  %s194_s10 = int_to_ptr.hbm [resolvable:$true] %s193_s10 }
  0x20   : > { %601 = dma.hbm_to_vmem [thread:$0]  (!%p941_p12), %s194_s10, 256, %s196_s12, %s182_s23, %s850_s24, %s851_s26, %s852_s27  }
  0x21   : > { %s209_s8 = scalar_lea.vmem [#allocation6], %s534_s6  ;;  %s218_s19 = sshll.u32 %s217_s5, 4  ;;  %s219_s19 = int_to_ptr.hbm [resolvable:$true] %s218_s19 }
  0x22   : > { %s220_s9 = sshll.u32 %s209_s8, 4  ;;  %s206_s11 = scalar_lea.sflag [#allocation7], %s205_s22  ;;  %s221_s9 = int_to_ptr.vmem [resolvable:$true] %s220_s9 }
  0x23   : > { %s853_s0 = smov 16   ;;  %232 = sbr.rel (%p930_p8) target bundleno = 242 (0xf2), region = 32 }
  0x24   : > { %604 = dma.hbm_to_vmem [thread:$0]  (!%p941_p12), %s219_s19, 4096, %s221_s9, %s206_s11, %s850_s24, %s850_s24, %s853_s0  }
  0x25   : > { %s234_s30 = sand.u32 (!%p930_p8), 1, %s831_s13  }
  0x26   : > { %s539_s10 = sshll.u32 (!%p930_p8), %s234_s30, 4  ;;  %s235_s12 = scalar_lea.sflag (!%p930_p8), [#allocation4], %s234_s30 }
  0x27   : > { %s972_s23 = scalar_lea.vmem (!%p930_p8), [#allocation3], %s539_s10 }
  0x28   : > { %810 = dma.done.wait (%p922_p6), %s235_s12, 256  }
  0x29   : > { %812 = vsyncadd (%p922_p6), %s235_s12, 4294967040  ;;  %s244_s2 = sand.u32 1, %s907_s18   ;;  %s540_s28 = sshll.u32 %s234_s30, 8 }
  0x2a   : > { %s245_s0 = scalar_lea.sflag [#allocation7], %s244_s2  ;;  %s979_s22 = scalar_lea.vmem [#allocation6], %s540_s28 }
  0x2b   : > { %814 = dma.done.wait (%p922_p6), %s245_s0, 4096  }
  0x2c   : > { %816 = vsyncadd (%p922_p6), %s245_s0, 4294963200 }
  0x2d   : > { %818 = dma.done.wait (%p62_p3), [#allocation7], 32  }
  0x2e   : > { %820 = vsyncadd (%p62_p3), [#allocation7], 4294967264  ;;  %p542_p1 = scmp.ne.s32.totalorder %s839_s15, 0 }
  0x30   : > { %286 = sbr.rel (%p542_p1) target bundleno = 58 (0x3a), region = 48 }
  0x35   : > { %v854_v0 = vmov 0.0  }
  0x36   : > { %287 = vst [vmem:[#allocation2 + $0x10] sm:$0xff] %v854_v0 }
  0x37   : > { %288 = vst [vmem:[#allocation2] sm:$0xff] %v854_v0 }
  0x38   : > { %289 = vst [vmem:[#allocation2 + $0x18] sm:$0xff] %v854_v0 }
  0x39   : > { %290 = vst [vmem:[#allocation2 + $0x8] sm:$0xff] %v854_v0 }
  0x3a PF: > { %v327_v1 = vld [vmem:[%s979_s22 + $0xf0] sm:$0xff]  ;;  %v328_v2 = vld [vmem:[%s979_s22 + $0xf8] sm:$0xff]  ;;  %v325_v3 = vld [vmem:[%s979_s22 + $0xe0] sm:$0xff]  ;;  %p543_p2 = scmp.ne.s32.totalorder %s839_s15, 1 }
  0x3b   : > { %550 = vmatpush.msra.mxu2 %v327_v1  ;;  %566 = vmatpush.msra.mxu3 %v328_v2  ;;  %v326_v4 = vld [vmem:[%s979_s22 + $0xe8] sm:$0xff]  ;;  %v323_v5 = vld [vmem:[%s979_s22 + $0xd0] sm:$0xff]  ;;  %v324_v6 = vld [vmem:[%s979_s22 + $0xd8] sm:$0xff] }
  0x3c   : > { %329 = vmatpush.msra.mxu0 %v327_v1  ;;  %352 = vmatpush.msra.mxu1 %v328_v2  ;;  %v321_v7 = vld [vmem:[%s979_s22 + $0xc0] sm:$0xff]  ;;  %v322_v8 = vld [vmem:[%s979_s22 + $0xc8] sm:$0xff]  ;;  %v319_v9 = vld [vmem:[%s979_s22 + $0xb0] sm:$0xff] }
  0x3d   : > { %551 = vmatpush.msra.mxu2 %v325_v3  ;;  %567 = vmatpush.msra.mxu3 %v326_v4  ;;  %v320_v10 = vld [vmem:[%s979_s22 + $0xb8] sm:$0xff]  ;;  %v317_v11 = vld [vmem:[%s979_s22 + $0xa0] sm:$0xff]  ;;  %v318_v12 = vld [vmem:[%s979_s22 + $0xa8] sm:$0xff] }
  0x3e   : > { %330 = vmatpush.msra.mxu0 %v325_v3  ;;  %353 = vmatpush.msra.mxu1 %v326_v4  ;;  %v315_v13 = vld [vmem:[%s979_s22 + $0x90] sm:$0xff]  ;;  %v316_v14 = vld [vmem:[%s979_s22 + $0x98] sm:$0xff]  ;;  %v313_v15 = vld [vmem:[%s979_s22 + $0x80] sm:$0xff] }
  0x3f   : > { %552 = vmatpush.msra.mxu2 %v323_v5  ;;  %568 = vmatpush.msra.mxu3 %v324_v6  ;;  %v314_v16 = vld [vmem:[%s979_s22 + $0x88] sm:$0xff]  ;;  %v311_v17 = vld [vmem:[%s979_s22 + $0x70] sm:$0xff]  ;;  %v312_v18 = vld [vmem:[%s979_s22 + $0x78] sm:$0xff] }
  0x40   : > { %331 = vmatpush.msra.mxu0 %v323_v5  ;;  %354 = vmatpush.msra.mxu1 %v324_v6  ;;  %v309_v19 = vld [vmem:[%s979_s22 + $0x60] sm:$0xff]  ;;  %v310_v20 = vld [vmem:[%s979_s22 + $0x68] sm:$0xff]  ;;  %v307_v21 = vld [vmem:[%s979_s22 + $0x50] sm:$0xff] }
  0x41   : > { %553 = vmatpush.msra.mxu2 %v321_v7  ;;  %569 = vmatpush.msra.mxu3 %v322_v8  ;;  %v308_v22 = vld [vmem:[%s979_s22 + $0x58] sm:$0xff]  ;;  %v305_v23 = vld [vmem:[%s979_s22 + $0x40] sm:$0xff]  ;;  %v306_v24 = vld [vmem:[%s979_s22 + $0x48] sm:$0xff] }
  0x42   : > { %332 = vmatpush.msra.mxu0 %v321_v7  ;;  %355 = vmatpush.msra.mxu1 %v322_v8  ;;  %v303_v25 = vld [vmem:[%s979_s22 + $0x30] sm:$0xff]  ;;  %v304_v26 = vld [vmem:[%s979_s22 + $0x38] sm:$0xff]  ;;  %v301_v27 = vld [vmem:[%s979_s22 + $0x20] sm:$0xff] }
  0x43   : > { %554 = vmatpush.msra.mxu2 %v319_v9  ;;  %570 = vmatpush.msra.mxu3 %v320_v10  ;;  %v302_v28 = vld [vmem:[%s979_s22 + $0x28] sm:$0xff]  ;;  %v299_v29 = vld [vmem:[%s979_s22 + $0x10] sm:$0xff]  ;;  %v300_v30 = vld [vmem:[%s979_s22 + $0x18] sm:$0xff] }
  0x44   : > { %333 = vmatpush.msra.mxu0 %v319_v9  ;;  %356 = vmatpush.msra.mxu1 %v320_v10  ;;  %v297_v31 = vld [vmem:[%s979_s22] sm:$0xff]  ;;  %v298_v32 = vld [vmem:[%s979_s22 + $0x8] sm:$0xff]  ;;  %v293_v35 = vld [vmem:[#allocation2 + $0x10] sm:$0xff] }
  0x45   : > { %555 = vmatpush.msra.mxu2 %v317_v11  ;;  %571 = vmatpush.msra.mxu3 %v318_v12  ;;  %v292_v33 = vld [vmem:[%s972_s23 + $0x8] sm:$0xff]  ;;  %v291_v34 = vld [vmem:[%s972_s23] sm:$0xff] }
  0x46   : > { %334 = vmatpush.msra.mxu0 %v317_v11  ;;  %357 = vmatpush.msra.mxu1 %v318_v12  ;;  %v294_v36 = vld [vmem:[#allocation2] sm:$0xff]  ;;  %v295_v41 = vld [vmem:[#allocation2 + $0x18] sm:$0xff]  ;;  %v296_v42 = vld [vmem:[#allocation2 + $0x8] sm:$0xff] }
  0x47   : > { %556 = vmatpush.msra.mxu2 %v315_v13  ;;  %572 = vmatpush.msra.mxu3 %v316_v14 }
  0x48   : > { %335 = vmatpush.msra.mxu0 %v315_v13  ;;  %358 = vmatpush.msra.mxu1 %v316_v14 }
  0x49   : > { %557 = vmatpush.msra.mxu2 %v313_v15  ;;  %573 = vmatpush.msra.mxu3 %v314_v16 }
  0x4a   : > { %336 = vmatpush.msra.mxu0 %v313_v15  ;;  %359 = vmatpush.msra.mxu1 %v314_v16 }
  0x4b   : > { %558 = vmatpush.msra.mxu2 %v311_v17  ;;  %574 = vmatpush.msra.mxu3 %v312_v18 }
  0x4c   : > { %337 = vmatpush.msra.mxu0 %v311_v17  ;;  %360 = vmatpush.msra.mxu1 %v312_v18 }
  0x4d   : > { %559 = vmatpush.msra.mxu2 %v309_v19  ;;  %575 = vmatpush.msra.mxu3 %v310_v20 }
  0x4e   : > { %338 = vmatpush.msra.mxu0 %v309_v19  ;;  %361 = vmatpush.msra.mxu1 %v310_v20 }
  0x4f   : > { %560 = vmatpush.msra.mxu2 %v307_v21  ;;  %576 = vmatpush.msra.mxu3 %v308_v22 }
  0x50   : > { %339 = vmatpush.msra.mxu0 %v307_v21  ;;  %362 = vmatpush.msra.mxu1 %v308_v22 }
  0x51   : > { %561 = vmatpush.msra.mxu2 %v305_v23  ;;  %577 = vmatpush.msra.mxu3 %v306_v24 }
  0x52   : > { %340 = vmatpush.msra.mxu0 %v305_v23  ;;  %363 = vmatpush.msra.mxu1 %v306_v24 }
  0x53   : > { %562 = vmatpush.msra.mxu2 %v303_v25  ;;  %578 = vmatpush.msra.mxu3 %v304_v26 }
  0x54   : > { %341 = vmatpush.msra.mxu0 %v303_v25  ;;  %364 = vmatpush.msra.mxu1 %v304_v26 }
  0x55   : > { %563 = vmatpush.msra.mxu2 %v301_v27  ;;  %579 = vmatpush.msra.mxu3 %v302_v28 }
  0x56   : > { %342 = vmatpush.msra.mxu0 %v301_v27  ;;  %365 = vmatpush.msra.mxu1 %v302_v28 }
  0x57   : > { %564 = vmatpush.msra.mxu2 %v299_v29  ;;  %580 = vmatpush.msra.mxu3 %v300_v30 }
  0x58   : > { %343 = vmatpush.msra.mxu0 %v299_v29  ;;  %366 = vmatpush.msra.mxu1 %v300_v30 }
  0x59   : > { %565 = vmatpush.msra.mxu2 %v297_v31  ;;  %581 = vmatpush.msra.mxu3 %v298_v32 }
  0x5a   : > { %348 = vmatmul.f32.vlgmr.msra.gmra.mxu2 %v292_v33  ;;  %371 = vmatmul.f32.vlgmr.msra.gmra.mxu3 %v292_v33 }
  0x5b   : > { %344 = vmatpush.msra.mxu0 %v297_v31  ;;  %367 = vmatpush.msra.mxu1 %v298_v32 }
  0x5c   : > { %345 = vmatmul.f32.vlgmr.msra.gmra.mxu0 %v291_v34  ;;  %368 = vmatmul.f32.vlgmr.msra.gmra.mxu1 %v291_v34 }
  0xd9   : > { %v346_v37 = vpop.f32.mrf.mxu0  ;;  %v369_v38 = vpop.f32.mrf.mxu1 }
  0xda   : > { %v375_v39 = vadd.f32 %v346_v37, %v293_v35  ;;  %v376_v40 = vadd.f32 %v369_v38, %v294_v36 }
  0xdc   : > { %379 = vst [vmem:[#allocation2 + $0x10] sm:$0xff] %v375_v39 }
  0xdd   : > { %v349_v43 = vpop.f32.mrf.mxu2  ;;  %380 = vst [vmem:[#allocation2] sm:$0xff] %v376_v40  ;;  %v372_v44 = vpop.f32.mrf.mxu3  ;;  %386 = sbr.rel (%p543_p2) target bundleno = 236 (0xec), region = 52 }
  0xde   : > { %v377_v45 = vadd.f32 %v349_v43, %v295_v41  ;;  %v378_v46 = vadd.f32 %v372_v44, %v296_v42 }
  0xe0   : > { %381 = vst [vmem:[#allocation2 + $0x18] sm:$0xff] %v377_v45 }
  0xe1   : > { %382 = vst [vmem:[#allocation2 + $0x8] sm:$0xff] %v378_v46 }
  0xe2   : > { %v391_v48 = vld [vmem:[#allocation8] sm:$0x3] }
  0xe3   : > { %v387_v47 = vld [vmem:[#allocation2 + $0x10] sm:$0xff]  ;;  %v393_v50 = vperm.slane %v391_v48, 0  ;;  %v394_v51 = vperm.slane %v391_v48, 1 }
  0xe4   : > { %v388_v49 = vld [vmem:[#allocation2] sm:$0xff] }
  0xe5   : > { %v397_v54 = vadd.f32 %v393_v50, %v387_v47  ;;  %v398_v55 = vadd.f32 %v394_v51, %v388_v49 }
  0xe7   : > { %v389_v52 = vld [vmem:[#allocation2 + $0x18] sm:$0xff]  ;;  %401 = vst [vmem:[#allocation9] sm:$0xff] %v397_v54 }
  0xe8   : > { %v390_v53 = vld [vmem:[#allocation2 + $0x8] sm:$0xff]  ;;  %v399_v56 = vadd.f32 %v393_v50, %v389_v52  ;;  %402 = vst [vmem:[#allocation9 + $0x8] sm:$0xff] %v398_v55 }
  0xe9   : > { %v400_v57 = vadd.f32 %v394_v51, %v390_v53 }
  0xea   : > { %403 = vst [vmem:[#allocation9 + $0x10] sm:$0xff] %v399_v56 }
  0xeb   : > { %404 = vst [vmem:[#allocation9 + $0x18] sm:$0xff] %v400_v57 }
  0xec PF: > { %p608_p3 = scmp.eq.s32.totalorder %s907_s18, 1  ;;  %s418_s25 = sshll.u32 %s1050_s3, 4  ;;  %s419_s25 = int_to_ptr.hbm [resolvable:$true] %s418_s25 }
  0xed   : > { %s855_s24 = smov [#allocation9]   ;;  %s856_s27 = smov 256  }
  0xee   : > { %s416_s26 = sshll.u32 %s855_s24, 4  ;;  %s857_s6 = smov 16   ;;  %s417_s26 = int_to_ptr.vmem [resolvable:$true] %s416_s26 }
  0xef   : > { %591 = dma.vmem_to_hbm [thread:$0]  (%p608_p3), %s417_s26, 512, %s419_s25, [#allocation5], %s856_s27, %s856_s27, %s857_s6  }
  0xf0   : > { %822 = dma.done.wait (%p608_p3), [#allocation5], 512  }
  0xf1   : > { %824 = vsyncadd (%p608_p3), [#allocation5], 4294966784 }
  0xf2 PF: > { %s20_s17 = sadd.s32 1, %s847_s17   ;;  %s1059_s12 = smov %s831_s13 }
  0xf3   : > { %p17_p4 = scmp.ge.s32.totalorder %s20_s17, 4   ;;  %s1060_s13 = smov %s835_s14 }
  0xf4   : > { %s1061_s14 = smov %s958_s20  ;;  %s1062_s15 = smov %s843_s16 }
  0xf5   : > { %s1063_s16 = smov %s1065_s29  ;;  %19 = sbr.rel (!%p17_p4) target bundleno = 10 (0xa), region = 96 }
  0xfa   :  { %435 = vsyncpa [#allocation4], 1 }
  0xfb   :  { %437 = vsyncpa [#allocation4 + $0x1], 1 }
  0xfc   :  { %438 = vsyncpa [#allocation7], 1 }
  0xfd   :  { %440 = vsyncpa [#allocation7 + $0x1], 1 }
  0xfe   :  { %441 = vsyncpa [#allocation5], 1 }
  0xff   :  { %443 = vsyncpa [#allocation5 + $0x1], 1 }

</bundles_post_ra>
